<compile_context>
chip_gen: v5e
topology: v5e:2x2
jax: 0.10.0
libtpu: 0.0.40
codegen_flags: <defaults>
</compile_context>

<pallas_src>
import functools

import jax
import jax.numpy as jnp
from jax.experimental import pallas as pl
from jax.experimental.pallas import tpu as pltpu

NEG_SLOPE = 0.01  # nn.LeakyReLU default


def _leaky(x):
    # LeakyReLU(0.01): max(x, 0.01*x) is exact for 0 < slope < 1.
    return jnp.maximum(x, NEG_SLOPE * x)


def _dsconv_kernel(x_ref, wdw_ref, t1_ref, wpw_ref, t2_ref, o_ref,
                   *, kernel_size, tile_l, use_mxu):
    # x_ref:   (1, 1, C_in, TILE_IN)  input tile + halo (TILE_IN = tile_l + halo)
    # wdw_ref: (C_in, K)              depthwise weights, BN1 scale folded in
    # t1_ref:  (C_in, 1)              BN1 shift (+ folded depthwise bias)
    # wpw_ref: (C_out, C_in)          pointwise weights, BN2 scale folded in
    # t2_ref:  (C_out, 1)             BN2 shift (+ folded pointwise bias)
    # o_ref:   (1, C_out, tile_l)
    x = x_ref[0, 0]                                  # (C_in, TILE_IN) f32
    tile_in = x.shape[-1]

    # Depthwise "valid" conv: out[c, i] = sum_k w[c, k] * x[c, i + k].
    # Shifted reads come from XLU lane rotations on the 128-aligned tile; the
    # wrapped-around tail (columns >= tile_l) is junk and is discarded by the
    # tile-aligned [:, :tile_l] slice below.
    acc = x * wdw_ref[:, 0:1]
    for k in range(1, kernel_size):                  # K small -> static unroll
        shifted = pltpu.roll(x, shift=tile_in - k, axis=1)   # == x[:, i + k]
        acc = acc + shifted * wdw_ref[:, k:k + 1]

    # BN1 (scale pre-folded into wdw) + LeakyReLU on the valid columns.
    h = _leaky(acc[:, :tile_l] + t1_ref[...])        # (C_in, tile_l) f32

    # Pointwise 1x1 conv == channel matmul.
    if use_mxu:
        w = wpw_ref[...]                             # bf16 (folded + pre-cast)
        z = jnp.dot(w, h.astype(w.dtype),
                    preferred_element_type=jnp.float32)      # (C_out, tile_l)
    else:
        # Tiny C_in: MXU contraction would be badly underfilled; use VPU FMAs.
        c_in = h.shape[0]
        z = wpw_ref[:, 0:1] * h[0:1, :]
        for c in range(1, c_in):
            z = z + wpw_ref[:, c:c + 1] * h[c:c + 1, :]

    # BN2 (scale pre-folded into wpw) + LeakyReLU; full-width lane-dense store.
    o_ref[0] = _leaky(z + t2_ref[...]).astype(o_ref.dtype)


def depth_separable_conv1d(x, params, kernel_size, *, max_tile_l=512):
    """x: (N, C_in, L) f32.  Returns (N, C_out, L - K + 1) f32 (eval-mode BN)."""
    N, C_in, L = x.shape
    K = kernel_size
    L_out = L - K + 1
    assert L_out >= 1
    assert max_tile_l % 128 == 0

    # ---- fold BN (eval mode) + conv biases into per-channel scale/shift ----
    def fold(gamma, beta, mean, var, bias, eps=1e-5):
        scale = gamma / jnp.sqrt(var + eps)
        shift = beta - scale * mean + scale * bias
        return scale.astype(jnp.float32), shift.astype(jnp.float32)

    s1, t1 = fold(params["bn1_gamma"], params["bn1_beta"],
                  params["bn1_mean"], params["bn1_var"], params["dw_bias"])
    s2, t2 = fold(params["bn2_gamma"], params["bn2_beta"],
                  params["bn2_mean"], params["bn2_var"], params["pw_bias"])

    wdw = params["dw_weight"].reshape(C_in, K).astype(jnp.float32)
    wpw = params["pw_weight"].reshape(-1, C_in).astype(jnp.float32)
    C_out = wpw.shape[0]

    # Fold BN scales into the conv weights (weight-side, once per call):
    #   scale1_c * (w_dw[c] . x[c]) == (scale1_c * w_dw[c]) . x[c]
    #   scale2   * (W_pw @ h)       == (scale2[:, None] * W_pw) @ h
    wdw_s = wdw * s1[:, None]
    wpw_s = wpw * s2[:, None]
    t1 = t1[:, None]                                  # (C_in, 1)
    t2 = t2[:, None]                                  # (C_out, 1)

    use_mxu = C_in > 8
    if use_mxu:
        # bf16 operands keep the v6e/v7x MXU at full rate; accumulation is f32.
        wpw_s = wpw_s.astype(jnp.bfloat16)

    # ---- length tiling: lane-aligned output tiles + materialized halo ------
    tile_l = min(max_tile_l, pl.cdiv(L_out, 128) * 128)      # multiple of 128
    n_tiles = pl.cdiv(L_out, tile_l)
    halo = max(128, pl.cdiv(K - 1, 128) * 128)               # 128-aligned halo
    tile_in = tile_l + halo
    l_pad = n_tiles * tile_l + halo                          # >= L always

    xf = x.astype(jnp.float32)
    x_pad = jnp.pad(xf, ((0, 0), (0, 0), (0, l_pad - L)))
    # (N, n_tiles, C_in, tile_in): tile t holds columns [t*tile_l, t*tile_l+tile_in)
    x_tiles = jnp.stack(
        [x_pad[:, :, t * tile_l: t * tile_l + tile_in] for t in range(n_tiles)],
        axis=1)

    kernel = functools.partial(_dsconv_kernel, kernel_size=K,
                               tile_l=tile_l, use_mxu=use_mxu)

    flops = int(N * n_tiles * tile_l
                * (2 * K * C_in + 2 * C_in * C_out + 4 * (C_in + C_out)))
    bytes_accessed = int(x_tiles.size * 4
                         + N * C_out * n_tiles * tile_l * 4
                         + wdw_s.size * 4 + wpw_s.size * wpw_s.dtype.itemsize
                         + t1.size * 4 + t2.size * 4)

    out = pl.pallas_call(
        kernel,
        out_shape=jax.ShapeDtypeStruct((N, C_out, n_tiles * tile_l), jnp.float32),
        grid=(N, n_tiles),
        in_specs=[
            pl.BlockSpec((1, 1, C_in, tile_in), lambda n, t: (n, t, 0, 0)),  # x tile
            pl.BlockSpec((C_in, K), lambda n, t: (0, 0)),                    # dw W
            pl.BlockSpec((C_in, 1), lambda n, t: (0, 0)),                    # shift1
            pl.BlockSpec((C_out, C_in), lambda n, t: (0, 0)),                # pw W
            pl.BlockSpec((C_out, 1), lambda n, t: (0, 0)),                   # shift2
        ],
        out_specs=pl.BlockSpec((1, C_out, tile_l), lambda n, t: (n, 0, t)),
        compiler_params=pltpu.CompilerParams(
            dimension_semantics=("parallel", "parallel")),
        cost_estimate=pl.CostEstimate(flops=flops, transcendentals=0,
                                      bytes_accessed=bytes_accessed),
    )(x_tiles, wdw_s, t1, wpw_s, t2)

    # Drop the lane-padding tail (garbage columns beyond the valid length).
    return out[:, :, :L_out]


def _reference(x, params, kernel_size):
    """Pure-JAX reference mirroring the PyTorch forward (BN in eval mode)."""
    N, C_in, L = x.shape
    L_out = L - kernel_size + 1
    wdw = params["dw_weight"].reshape(C_in, kernel_size)
    dw = jnp.zeros((N, C_in, L_out), jnp.float32)
    for k in range(kernel_size):
        dw = dw + x[:, :, k:k + L_out] * wdw[None, :, k:k + 1]
    dw = dw + params["dw_bias"][None, :, None]

    def bn(z, g, b, m, v, eps=1e-5):
        return (z - m[None, :, None]) / jnp.sqrt(v[None, :, None] + eps) \
               * g[None, :, None] + b[None, :, None]

    def leaky(z):
        return jnp.where(z > 0, z, NEG_SLOPE * z)

    h = leaky(bn(dw, params["bn1_gamma"], params["bn1_beta"],
                 params["bn1_mean"], params["bn1_var"]))
    wpw = params["pw_weight"].reshape(-1, C_in)
    z = jnp.einsum("oc,ncl->nol", wpw, h) + params["pw_bias"][None, :, None]
    return leaky(bn(z, params["bn2_gamma"], params["bn2_beta"],
                    params["bn2_mean"], params["bn2_var"]))


def _make_params(key, C_in, C_out, K):
    ks = jax.random.split(key, 12)
    return {
        # nn.Conv1d(C_in, C_in, K, groups=C_in): weight (C_in, 1, K), bias (C_in,)
        "dw_weight": jax.random.normal(ks[0], (C_in, 1, K), jnp.float32) * 0.3,
        "dw_bias":   jax.random.normal(ks[1], (C_in,), jnp.float32) * 0.1,
        # BatchNorm1d(C_in) — eval-mode running stats
        "bn1_gamma": 1.0 + 0.1 * jax.random.normal(ks[2], (C_in,), jnp.float32),
        "bn1_beta":  0.1 * jax.random.normal(ks[3], (C_in,), jnp.float32),
        "bn1_mean":  0.1 * jax.random.normal(ks[4], (C_in,), jnp.float32),
        "bn1_var":   jnp.abs(1.0 + 0.1 * jax.random.normal(ks[5], (C_in,), jnp.float32)),
        # nn.Conv1d(C_in, C_out, 1): weight (C_out, C_in, 1), bias (C_out,)
        "pw_weight": jax.random.normal(ks[6], (C_out, C_in, 1), jnp.float32) * 0.3,
        "pw_bias":   jax.random.normal(ks[7], (C_out,), jnp.float32) * 0.1,
        # BatchNorm1d(C_out)
        "bn2_gamma": 1.0 + 0.1 * jax.random.normal(ks[8], (C_out,), jnp.float32),
        "bn2_beta":  0.1 * jax.random.normal(ks[9], (C_out,), jnp.float32),
        "bn2_mean":  0.1 * jax.random.normal(ks[10], (C_out,), jnp.float32),
        "bn2_var":   jnp.abs(1.0 + 0.1 * jax.random.normal(ks[11], (C_out,), jnp.float32)),
    }


if __name__ == "__main__":
    root = jax.random.PRNGKey(0)
    k_small, k_large, kx1, kx2 = jax.random.split(root, 4)

    # --- Config 1: tiny module shapes (VPU pointwise path, exact f32) -------
    N, C_in, C_out, L, K = 2, 4, 8, 16, 3
    params = _make_params(k_small, C_in, C_out, K)
    x = jax.random.normal(kx1, (N, C_in, L), jnp.float32)
    out = jax.block_until_ready(depth_separable_conv1d(x, params, K))
    ref = _reference(x, params, K)
    assert out.shape == (N, C_out, L - K + 1), out.shape
    assert jnp.allclose(out, ref, atol=1e-4, rtol=1e-4), \
        f"small-config max err {jnp.max(jnp.abs(out - ref))}"

    # --- Config 2: larger shapes (multi-tile halos + bf16 MXU path) ---------
    N2, C_in2, C_out2, L2, K2 = 2, 32, 64, 1200, 5
    params2 = _make_params(k_large, C_in2, C_out2, K2)
    x2 = jax.random.normal(kx2, (N2, C_in2, L2), jnp.float32)
    out2 = jax.block_until_ready(depth_separable_conv1d(x2, params2, K2))
    ref2 = _reference(x2, params2, K2)
    assert out2.shape == (N2, C_out2, L2 - K2 + 1), out2.shape
    # bf16 MXU operands with f32 accumulation -> allow ~1e-2-level deviation.
    assert jnp.allclose(out2, ref2, atol=5e-2, rtol=5e-2), \
        f"large-config max err {jnp.max(jnp.abs(out2 - ref2))}"

    print("KERNEL_OK")
</pallas_src>

<mosaic_0001>
module attributes {stable_mosaic.version = 11 : i64} {
  func.func @_dsconv_kernel(%arg0: i32, %arg1: i32, %arg2: memref<1x1x4x256xf32, #tpu.memory_space<vmem>>, %arg3: memref<4x3xf32, #tpu.memory_space<vmem>>, %arg4: memref<4x1xf32, #tpu.memory_space<vmem>>, %arg5: memref<8x4xf32, #tpu.memory_space<vmem>>, %arg6: memref<8x1xf32, #tpu.memory_space<vmem>>, %arg7: memref<1x8x128xf32, #tpu.memory_space<vmem>>) attributes {dimension_semantics = [#tpu.dimension_semantics<parallel>, #tpu.dimension_semantics<parallel>], iteration_bounds = array<i64: 2, 1>, scalar_prefetch = 0 : i64, scratch_operands = 0 : i64, tpu.core_type = #tpu.core_type<tc>, window_params = [{transform_indices = @transform_0, window_bounds = array<i64: 1, 1, 4, 256>}, {pipeline_mode = #tpu.pipeline_mode<synchronous>, transform_indices = @transform_1, window_bounds = array<i64: 4, 3>}, {pipeline_mode = #tpu.pipeline_mode<synchronous>, transform_indices = @transform_2, window_bounds = array<i64: 4, 1>}, {pipeline_mode = #tpu.pipeline_mode<synchronous>, transform_indices = @transform_3, window_bounds = array<i64: 8, 4>}, {pipeline_mode = #tpu.pipeline_mode<synchronous>, transform_indices = @transform_4, window_bounds = array<i64: 8, 1>}, {transform_indices = @transform_5, window_bounds = array<i64: 1, 8, 128>}]} {
    %c0 = arith.constant 0 : index
    %c0_0 = arith.constant 0 : index
    %c0_1 = arith.constant 0 : index
    %c0_2 = arith.constant 0 : index
    %0 = vector.load %arg2[%c0, %c0_0, %c0_1, %c0_2] : memref<1x1x4x256xf32, #tpu.memory_space<vmem>>, vector<1x1x4x256xf32>
    %1 = vector.shape_cast %0 : vector<1x1x4x256xf32> to vector<4x256xf32>
    %c0_3 = arith.constant 0 : index
    %c0_4 = arith.constant 0 : index
    %2 = vector.load %arg3[%c0_3, %c0_4] : memref<4x3xf32, #tpu.memory_space<vmem>>, vector<4x1xf32>
    %3 = vector.broadcast %2 : vector<4x1xf32> to vector<4x256xf32>
    %4 = arith.mulf %1, %3 : vector<4x256xf32>
    %c255_i32 = arith.constant 255 : i32
    %5 = tpu.dynamic_rotate %1 by %c255_i32 dim 1 : vector<4x256xf32>, i32 -> vector<4x256xf32>
    %c0_5 = arith.constant 0 : index
    %c1 = arith.constant 1 : index
    %6 = vector.load %arg3[%c0_5, %c1] : memref<4x3xf32, #tpu.memory_space<vmem>>, vector<4x1xf32>
    %7 = vector.broadcast %6 : vector<4x1xf32> to vector<4x256xf32>
    %8 = arith.mulf %5, %7 : vector<4x256xf32>
    %9 = arith.addf %4, %8 : vector<4x256xf32>
    %c254_i32 = arith.constant 254 : i32
    %10 = tpu.dynamic_rotate %1 by %c254_i32 dim 1 : vector<4x256xf32>, i32 -> vector<4x256xf32>
    %c0_6 = arith.constant 0 : index
    %c2 = arith.constant 2 : index
    %11 = vector.load %arg3[%c0_6, %c2] : memref<4x3xf32, #tpu.memory_space<vmem>>, vector<4x1xf32>
    %12 = vector.broadcast %11 : vector<4x1xf32> to vector<4x256xf32>
    %13 = arith.mulf %10, %12 : vector<4x256xf32>
    %14 = arith.addf %9, %13 : vector<4x256xf32>
    %15 = vector.extract_strided_slice %14 {offsets = [0, 0], sizes = [4, 128], strides = [1, 1]} : vector<4x256xf32> to vector<4x128xf32>
    %c0_7 = arith.constant 0 : index
    %c0_8 = arith.constant 0 : index
    %16 = vector.load %arg4[%c0_7, %c0_8] : memref<4x1xf32, #tpu.memory_space<vmem>>, vector<4x1xf32>
    %17 = vector.broadcast %16 : vector<4x1xf32> to vector<4x128xf32>
    %18 = arith.addf %15, %17 : vector<4x128xf32>
    %cst = arith.constant 0.00999999977 : f32
    %19 = vector.broadcast %cst : f32 to vector<4x128xf32>
    %20 = arith.mulf %19, %18 : vector<4x128xf32>
    %21 = arith.maximumf %18, %20 : vector<4x128xf32>
    %c0_9 = arith.constant 0 : index
    %c0_10 = arith.constant 0 : index
    %22 = vector.load %arg5[%c0_9, %c0_10] : memref<8x4xf32, #tpu.memory_space<vmem>>, vector<8x1xf32>
    %23 = vector.extract_strided_slice %21 {offsets = [0, 0], sizes = [1, 128], strides = [1, 1]} : vector<4x128xf32> to vector<1x128xf32>
    %24 = vector.broadcast %22 : vector<8x1xf32> to vector<8x128xf32>
    %25 = vector.broadcast %23 : vector<1x128xf32> to vector<8x128xf32>
    %26 = arith.mulf %24, %25 : vector<8x128xf32>
    %c0_11 = arith.constant 0 : index
    %c1_12 = arith.constant 1 : index
    %27 = vector.load %arg5[%c0_11, %c1_12] : memref<8x4xf32, #tpu.memory_space<vmem>>, vector<8x1xf32>
    %28 = vector.extract_strided_slice %21 {offsets = [1, 0], sizes = [1, 128], strides = [1, 1]} : vector<4x128xf32> to vector<1x128xf32>
    %29 = vector.broadcast %27 : vector<8x1xf32> to vector<8x128xf32>
    %30 = vector.broadcast %28 : vector<1x128xf32> to vector<8x128xf32>
    %31 = arith.mulf %29, %30 : vector<8x128xf32>
    %32 = arith.addf %26, %31 : vector<8x128xf32>
    %c0_13 = arith.constant 0 : index
    %c2_14 = arith.constant 2 : index
    %33 = vector.load %arg5[%c0_13, %c2_14] : memref<8x4xf32, #tpu.memory_space<vmem>>, vector<8x1xf32>
    %34 = vector.extract_strided_slice %21 {offsets = [2, 0], sizes = [1, 128], strides = [1, 1]} : vector<4x128xf32> to vector<1x128xf32>
    %35 = vector.broadcast %33 : vector<8x1xf32> to vector<8x128xf32>
    %36 = vector.broadcast %34 : vector<1x128xf32> to vector<8x128xf32>
    %37 = arith.mulf %35, %36 : vector<8x128xf32>
    %38 = arith.addf %32, %37 : vector<8x128xf32>
    %c0_15 = arith.constant 0 : index
    %c3 = arith.constant 3 : index
    %39 = vector.load %arg5[%c0_15, %c3] : memref<8x4xf32, #tpu.memory_space<vmem>>, vector<8x1xf32>
    %40 = vector.extract_strided_slice %21 {offsets = [3, 0], sizes = [1, 128], strides = [1, 1]} : vector<4x128xf32> to vector<1x128xf32>
    %41 = vector.broadcast %39 : vector<8x1xf32> to vector<8x128xf32>
    %42 = vector.broadcast %40 : vector<1x128xf32> to vector<8x128xf32>
    %43 = arith.mulf %41, %42 : vector<8x128xf32>
    %44 = arith.addf %38, %43 : vector<8x128xf32>
    %c0_16 = arith.constant 0 : index
    %c0_17 = arith.constant 0 : index
    %45 = vector.load %arg6[%c0_16, %c0_17] : memref<8x1xf32, #tpu.memory_space<vmem>>, vector<8x1xf32>
    %46 = vector.broadcast %45 : vector<8x1xf32> to vector<8x128xf32>
    %47 = arith.addf %44, %46 : vector<8x128xf32>
    %cst_18 = arith.constant 0.00999999977 : f32
    %48 = vector.broadcast %cst_18 : f32 to vector<8x128xf32>
    %49 = arith.mulf %48, %47 : vector<8x128xf32>
    %50 = arith.maximumf %47, %49 : vector<8x128xf32>
    %c0_19 = arith.constant 0 : index
    %c0_20 = arith.constant 0 : index
    %c0_21 = arith.constant 0 : index
    %51 = vector.load %arg7[%c0_19, %c0_20, %c0_21] : memref<1x8x128xf32, #tpu.memory_space<vmem>>, vector<1x8x128xf32>
    %52 = vector.shape_cast %51 : vector<1x8x128xf32> to vector<8x128xf32>
    %53 = vector.shape_cast %50 : vector<8x128xf32> to vector<1x8x128xf32>
    tpu.vector_store %arg7[%c0_19, %c0_20, %c0_21], %53 {strides = array<i32>} : memref<1x8x128xf32, #tpu.memory_space<vmem>>, vector<1x8x128xf32>,
    return
  }
  func.func @transform_0(%arg0: i32, %arg1: i32) -> (i32, i32, i32, i32) {
    %c0_i32 = arith.constant 0 : i32
    %c0_i32_0 = arith.constant 0 : i32
    %c0_i32_1 = arith.constant 0 : i32
    return %arg0, %arg1, %c0_i32, %c0_i32_0 : i32, i32, i32, i32
  }
  func.func @transform_1(%arg0: i32, %arg1: i32) -> (i32, i32) {
    %c0_i32 = arith.constant 0 : i32
    %c0_i32_0 = arith.constant 0 : i32
    %c0_i32_1 = arith.constant 0 : i32
    return %c0_i32, %c0_i32_0 : i32, i32
  }
  func.func @transform_2(%arg0: i32, %arg1: i32) -> (i32, i32) {
    %c0_i32 = arith.constant 0 : i32
    %c0_i32_0 = arith.constant 0 : i32
    %c0_i32_1 = arith.constant 0 : i32
    return %c0_i32, %c0_i32_0 : i32, i32
  }
  func.func @transform_3(%arg0: i32, %arg1: i32) -> (i32, i32) {
    %c0_i32 = arith.constant 0 : i32
    %c0_i32_0 = arith.constant 0 : i32
    %c0_i32_1 = arith.constant 0 : i32
    return %c0_i32, %c0_i32_0 : i32, i32
  }
  func.func @transform_4(%arg0: i32, %arg1: i32) -> (i32, i32) {
    %c0_i32 = arith.constant 0 : i32
    %c0_i32_0 = arith.constant 0 : i32
    %c0_i32_1 = arith.constant 0 : i32
    return %c0_i32, %c0_i32_0 : i32, i32
  }
  func.func @transform_5(%arg0: i32, %arg1: i32) -> (i32, i32, i32) {
    %c0_i32 = arith.constant 0 : i32
    %c0_i32_0 = arith.constant 0 : i32
    return %arg0, %c0_i32, %arg1 : i32, i32, i32
  }
}

</mosaic_0001>

<bundles_post_ra>
// kernel: tpu_custom_call.1
= control target key start
LH: loop header
LB: loop body
LE: loop exit
PB: predicated region body
PF: predicated region fallthrough
CT: control target
= control target key end

     0   :  { %10 = vsyncpa [#allocation3], 0  ;;  %s777_s0 = inlined_call_operand.vmem [shape: f32[2,1,4,256], index: 0, kind: input, shape index: {}]   ;;  %s778_s1 = inlined_call_operand.vmem [shape: f32[4,3], index: 1, kind: input, shape index: {}]   ;;  %s779_s2 = inlined_call_operand.vmem [shape: f32[4,1], index: 2, kind: input, shape index: {}]   ;;  %s780_s3 = inlined_call_operand.vmem [shape: f32[8,4], index: 3, kind: input, shape index: {}]   ;;  %s781_s4 = inlined_call_operand.vmem [shape: f32[8,1], index: 4, kind: input, shape index: {}]   ;;  %s782_s5 = inlined_call_operand.hbm [shape: f32[2,8,128], index: 5, kind: output, shape index: {}]  }
   0x1   :  { %12 = vsyncpa [#allocation3 + $0x1], 0  ;;  %s662_s18 = smov 0   ;;  %s664_s19 = smov 0  }
   0x2   :  { %s666_s20 = smov 0   ;;  %s668_s21 = smov 0  }
   0x3   :  { %s670_s22 = smov 0   ;;  %s672_s23 = smov 0  }
   0x4 LB: > { %s461_s24 = sadd.s32 4294967295, %s623_s23   ;;  %s462_s25 = sadd.s32 4294967294, %s623_s23   ;;  %s623_s23 = sphi %s672_s23, %s18_s23   ;;  %s619_s22 = sphi %s670_s22, %s789_s22   ;;  %s615_s21 = sphi %s668_s21, %s788_s21   ;;  %s611_s20 = sphi %s666_s20, %s787_s20   ;;  %s607_s19 = sphi %s664_s19, %s786_s19   ;;  %s603_s18 = sphi %s662_s18, %s785_s18  }
   0x5   : > { %s30_s26 = sadd.s32 1, %s619_s22  ;;  %s151_s27 = sadd.s32 1, %s611_s20 }
   0x6   : > { %p32_p0 = scmp.ge.s32.totalorder %s30_s26, 2  ;;  %p161_p1 = scmp.ne.s32.totalorder %s611_s20, %s607_s19 }
   0x7   : > { %p162_p2 = scmp.eq.s32.totalorder %s461_s24, 1  ;;  %p167_p3 = scmp.ne.s32.totalorder %s607_s19, %s603_s18 }
   0x8   : > { %s791_s26 = smov (%p32_p0, %s30_s26), 0  ;;  %p168_p5 = scmp.eq.s32.totalorder %s462_s25, 1 }
   0x9   : > { %p702_p4 = por %p162_p2, %p161_p1  ;;  %s146_s29 = ssub.s32 %s619_s22, %s791_s26 }
   0xa   : > { %p465_p6 = scmp.ge.s32.totalorder %s623_s23, 1  ;;  %p149_p7 = scmp.eq.s32.totalorder %s146_s29, 0 }
   0xb   : > { %p709_p8 = por %p168_p5, %p167_p3  ;;  %p210_p9 = scmp.lt.s32.totalorder %s623_s23, 3 }
   0xc   : > { %s715_s6 = scalar_select %p149_p7, %s611_s20, %s151_s27  }
   0xd   : > { %p211_p10 = pnand %p465_p6, %p210_p9 }
   0xe   : > { %p242_p11 = scmp.lt.s32.totalorder (!%p211_p10), %s615_s21, 1  ;;  %s628_s16 = smov (!%p211_p10), 127  }
   0xf   : > { %214 = sbr.rel (%p211_p10) target bundleno = 196 (0xc4), region = 40  ;;  %s629_s25 = smov (!%p211_p10), 126  }
  0x10   : > { %s239_s11 = sand.u32 (!%p211_p10), 1, %s607_s19  }
  0x11   : > { %s466_s12 = sshll.u32 (!%p211_p10), %s239_s11, 3  ;;  %s368_s27 = scalar_lea.sflag (!%p211_p10), [#allocation3], %s239_s11 }
  0x12   : > { %s241_s17 = scalar_lea.vmem (!%p211_p10), [#allocation2], %s466_s12 }
  0x13   : > { %s381_s24 = sshll.u32 (!%p211_p10), %s241_s17, 4  ;;  %s382_s24 = int_to_ptr.vmem [resolvable:$true] %s381_s24 }
  0x14   : > { %v278_v0 = vld [vmem:[%s778_s1] sm:$0xf]  ;;  %v625_v1 = vmov 1   ;;  %v626_v2 = vmov 0   ;;  %s243_s9 = scalar_select %p242_p11, %s615_s21, 1  ;;  %v627_v3 = vmov 2   ;;  %v273_v15 = vlaneseq }
  0x15   : > { %536 = vset.pattern.permute.xlu1 %v625_v1  ;;  %539 = vset.pattern.permute.xlu2 %v626_v2  ;;  %v252_v5 = vld [vmem:[%s778_s1] sm:$0xf]  ;;  %v630_v14 = vmov 3   ;;  %v631_v20 = vmov 839922192   ;;  %vm289_vm2 = vcmask 1043456  }
  0x16   : > { %281 = vperm.xlu1 %536, %v278_v0   ;;  %538 = vset.pattern.permute.xlu0 %v627_v3  ;;  %s473_s10 = sshll.u32 %s243_s9, 3  ;;  %v319_v8 = vld [vmem:[%s779_s2] sm:$0xf]  ;;  %v274_v18 = vand.u32 127, %v273_v15  ;;  %v258_v21 = vunpack.c.l.s4 %v631_v20  ;;  %s565_s9 = scalar_lea.hbm %s782_s5, 16 }
  0x17   : > { %s250_s13 = scalar_lea.vmem %s777_s0, %s473_s10  ;;  %v328_v10 = vld [vmem:[%s780_s3] sm:$0xff] }
  0x18   : > { %v251_v4 = vld [vmem:[%s250_s13] sm:$0xff]  ;;  %vm275_vm0 = vcmp.lt.s32.totalorder %v274_v18, 127  ;;  %v259_v22 = vunpack.c.0.s8 %v258_v21  ;;  %vm302_vm1 = vcmp.lt.s32.totalorder %v274_v18, 126  ;;  %s470_s13 = sshll.u32 %s615_s21, 3 }
  0x19   : > { %264 = vst [vmem:[#allocation1] ss:$2 sm:$0xff] %v251_v4  ;;  %v305_v11 = vld [vmem:[%s778_s1] sm:$0xf] }
  0x1a   : > { %v357_v13 = vld [vmem:[%s781_s4] sm:$0xff] }
  0x1e   : > { %537 = vset.pattern.permute.xlu1 %v626_v2 }
  0x1f   : > { %255 = vperm.xlu1 %537, %v252_v5  }
  0x20   : > { %v265_v6 = vld.sshfl [vmem:[#allocation1] sm:$0xff pattern:$0x75316420]  ;;  %v266_v7 = vld.sshfl [vmem:[#allocation1 + $0x8] sm:$0xff pattern:$0x75316420] }
  0x21   : > { %269 = vrot.lane.b32.xlu0 %v265_v6, %s628_s16  ;;  %293 = vst [vmem:[#allocation1] ss:$2 sm:$0xff] %v251_v4 }
  0x27   : > { %322 = vperm.xlu1 %537, %v319_v8  }
  0x28   : > { %v294_v9 = vld.sshfl [vmem:[#allocation1] sm:$0xff pattern:$0x75316420]  ;;  %v295_v12 = vld.sshfl [vmem:[#allocation1 + $0x8] sm:$0xff pattern:$0x75316420] }
  0x29   : > { %271 = vrot.lane.b32.xlu0 %v266_v7, %s628_s16  ;;  %298 = vrot.lane.b32.xlu2 %v294_v9, %s629_s25  ;;  %s379_s16 = scalar_lea.hbm %s782_s5, %s470_s13 }
  0x2f   : > { %540 = vset.pattern.permute.xlu1 %v625_v1 }
  0x30   : > { %337 = vperm.xlu1 %540, %v328_v10  }
  0x31   : > { %308 = vperm.xlu0 %538, %v305_v11   ;;  %300 = vrot.lane.b32.xlu2 %v295_v12, %s629_s25  ;;  %s383_s25 = sshll.u32 %s379_s16, 4  ;;  %s384_s25 = int_to_ptr.hbm [resolvable:$true] %s383_s25 }
  0x32   : > { %s559_s21 = sshra.s32 %s384_s25, 4  ;;  %s560_s21 = int_to_ptr.hbm [resolvable:$true] %s559_s21 }
  0x33   : > { %s561_s29 = scalar_lea.hbm %s560_s21, 8  ;;  %p566_p1 = scmp.lt.s32.totalorder %s560_s21, %s782_s5 }
  0x34   : > { %p562_p12 = scmp.ne.s32.totalorder %s560_s21, %s561_s29  ;;  %p567_p2 = scmp.lt.s32.totalorder %s565_s9, %s561_s29 }
  0x36   : > { %p563_p13 = pnand %p562_p12, %p702_p4  ;;  %p568_p3 = por %p567_p2, %p566_p1 }
  0x38   : > { %543 = vset.pattern.permute.xlu1 %v626_v2  ;;  %p564_p0 = pneg %p563_p13 }
  0x39   : > { %360 = vperm.xlu1 %543, %v357_v13   ;;  %542 = vset.pattern.permute.xlu0 %v630_v14 }
  0x3a   : > { %331 = vperm.xlu2 %539, %v328_v10   ;;  %351 = vperm.xlu0 %542, %v328_v10   ;;  %p569_p5 = pnand %p568_p3, %p564_p0 }
  0x42   : > { %541 = vset.pattern.permute.xlu2 %v627_v3  ;;  %544 = vset.pattern.permute.xlu0 %v626_v2 }
  0x43   : > { %344 = vperm.xlu2 %541, %v328_v10  }
  0x83   : > { %v299_v19 = vpop.permute.xlu2 %298 }
  0x88   : > { %v282_v16 = vpop.permute.xlu1 %281 }
  0x8b   : > { %v301_v29 = vpop.permute.xlu2 %300 }
  0x8c   : > { %v304_v33 = vsel %vm302_vm1, %v301_v29, %v299_v19  ;;  %v303_v37 = vsel %vm302_vm1, %v299_v19, %v301_v29 }
  0x91   : > { %v256_v24 = vpop.permute.xlu1 %255 }
  0x92   : > { %v260_v27 = vperm.slane %v256_v24, %v259_v22 }
  0x93   : > { %v270_v17 = vpop.permute.xlu0 %269 }
  0x94   : > { %v262_v32 = vmul.f32 %v260_v27, %v251_v4  ;;  %v332_v43 = vpop.permute.xlu2 %331 }
  0x99   : > { %v323_v38 = vpop.permute.xlu1 %322 }
  0x9b   : > { %v272_v23 = vpop.permute.xlu0 %271 }
  0x9c   : > { %v277_v25 = vsel %vm275_vm0, %v272_v23, %v270_v17  ;;  %v276_v28 = vsel %vm275_vm0, %v270_v17, %v272_v23 }
  0x9d   : > { %v285_v26 = vmul.f32 %v282_v16, %v277_v25  ;;  %v284_v31 = vmul.f32 %v282_v16, %v276_v28  ;;  %v345_v52 = vpop.permute.xlu2 %344 }
  0x9f   : > { %v288_v30 = vrot.slane %v285_v26, 4 }
  0xa1   : > { %v290_v35 = vsel %vm289_vm2, %v284_v31, %v288_v30 }
  0xa2   : > { %v292_v41 = vadd.f32 %v290_v35, %v262_v32  ;;  %v338_v47 = vpop.permute.xlu1 %337 }
  0xa3   : > { %v309_v34 = vpop.permute.xlu0 %308 }
  0xa4   : > { %v312_v36 = vmul.f32 %v309_v34, %v304_v33  ;;  %v311_v39 = vmul.f32 %v309_v34, %v303_v37 }
  0xa6   : > { %v315_v40 = vrot.slane %v312_v36, 4 }
  0xa8   : > { %v316_v42 = vsel %vm289_vm2, %v311_v39, %v315_v40 }
  0xa9   : > { %v318_v44 = vadd.f32 %v316_v42, %v292_v41 }
  0xab   : > { %v325_v45 = vadd.f32 %v323_v38, %v318_v44  ;;  %v361_v61 = vpop.permute.xlu1 %360 }
  0xac   : > { %v352_v56 = vpop.permute.xlu0 %351 }
  0xad   : > { %v326_v46 = vmul.f32 0.01, %v325_v45 }
  0xaf   : > { %v327_v48 = vmax.f32 %v325_v45, %v326_v46 }
  0xb1   : > { %v334_v49 = vperm.slane %v327_v48, 0  ;;  %v340_v50 = vperm.slane %v327_v48, 1  ;;  %v347_v51 = vperm.slane %v327_v48, 2  ;;  %v354_v55 = vperm.slane %v327_v48, 3 }
  0xb3   : > { %v335_v53 = vmul.f32 %v334_v49, %v332_v43  ;;  %v341_v54 = vmul.f32 %v340_v50, %v338_v47  ;;  %v348_v58 = vmul.f32 %v347_v51, %v345_v52  ;;  %v355_v59 = vmul.f32 %v354_v55, %v352_v56 }
  0xb5   : > { %v342_v57 = vadd.f32 %v341_v54, %v335_v53 }
  0xb7   : > { %v349_v60 = vadd.f32 %v348_v58, %v342_v57 }
  0xb9   : > { %v356_v62 = vadd.f32 %v355_v59, %v349_v60 }
  0xbb   : > { %v363_v63 = vadd.f32 %v361_v61, %v356_v62 }
  0xbd   : > { %v364_v0 = vmul.f32 0.01, %v363_v63 }
  0xbf   : > { %v365_v1 = vmax.f32 %v363_v63, %v364_v0 }
  0xc1   : > { %366 = vst [vmem:[%s241_s17] sm:$0xff] %v365_v1 }
  0xc2   : > { %572 = shalt.err (!%p569_p5)
}
  0xc3   : > { %474 = dma.vmem_to_hbm [thread:$0]  (%p702_p4), %s382_s24, 128, %s384_s25, %s368_s27  }
  0xc4 PF: > { %p480_p6 = scmp.ge.s32.totalorder %s623_s23, 2  ;;  %s395_s11 = sand.u32 1, %s603_s18  }
  0xc5   : > { %s396_s13 = scalar_lea.sflag [#allocation3], %s395_s11 }
  0xc6   : > { %p477_p7 = pnand %p480_p6, %p709_p8 }
  0xc8   : > { %p478_p9 = pneg %p477_p7 }
  0xca   : > { %598 = dma.done.wait (%p478_p9), %s396_s13, 128  }
  0xcb   : > { %600 = vsyncadd (%p478_p9), %s396_s13, 4294967168  ;;  %s18_s23 = sadd.s32 1, %s623_s23   ;;  %s785_s18 = smov %s607_s19 }
  0xcc   : > { %p15_p10 = scmp.ge.s32.totalorder %s18_s23, 4   ;;  %s786_s19 = smov %s611_s20 }
  0xcd   : > { %s787_s20 = smov %s715_s6  ;;  %s788_s21 = smov %s619_s22 }
  0xce   : > { %s789_s22 = smov %s791_s26  ;;  %17 = sbr.rel (!%p15_p10) target bundleno = 4 (0x4), region = 75 }
  0xd3   :  { %402 = vsyncpa [#allocation3], 1 }
  0xd4   :  { %404 = vsyncpa [#allocation3 + $0x1], 1 }

</bundles_post_ra>
